<compile_context>
chip_gen: v5e
topology: v5e:2x2
jax: 0.10.0
libtpu: 0.0.40
codegen_flags: <defaults>
</compile_context>

<pallas_src>
import functools

import jax
import jax.numpy as jnp
from jax.experimental import pallas as pl
from jax.experimental.pallas import tpu as pltpu


def cond_conv_kernel(win_ref, wa_ref, wb_ref, b1_ref, w2_ref, b2_ref, out_ref,
                     *, num_channels, hidden):
    """One N-tile of the fused CondConv2d forward, computed transposed.

    win_ref : (C*kk, TN)   windows; lane dim = window*batch index
    wa_ref  : (C*O,  C*kk) block-diag per-channel cnn weights
    wb_ref  : (C*Hd, C*O)  block-diag hidden Linear weight (W1 repeated C times)
    b1_ref  : (C*Hd, 1)    tiled hidden bias
    w2_ref  : (n_out, Hd)  output Linear weight
    b2_ref  : (n_out, 1)   output bias, pre-scaled by C
    out_ref : (n_out, TN)  lane-dense output tile
    """
    win = win_ref[...]
    # Stage 1: all per-channel "conv" matmuls + ReLU in one block-diagonal dot.
    conv = jnp.maximum(
        jnp.dot(wa_ref[...], win, preferred_element_type=jnp.float32), 0.0)
    # Stage 2: per-channel hidden Linear + ReLU (block-diagonal W1), one dot.
    z = jnp.maximum(
        jnp.dot(wb_ref[...], conv, preferred_element_type=jnp.float32)
        + b1_ref[...], 0.0)
    # Channel sum (module's `result[w_idx] += xx`), then the single output Linear.
    h = z[0:hidden, :]
    for c in range(1, num_channels):
        h = h + z[c * hidden:(c + 1) * hidden, :]
    out_ref[...] = (jnp.dot(w2_ref[...], h, preferred_element_type=jnp.float32)
                    + b2_ref[...]).astype(out_ref.dtype)


def _round_up(x, m):
    return (x + m - 1) // m * m


def _block_diag(blocks):
    rows = sum(b.shape[0] for b in blocks)
    cols = sum(b.shape[1] for b in blocks)
    out = jnp.zeros((rows, cols), blocks[0].dtype)
    r = c = 0
    for b in blocks:
        out = out.at[r:r + b.shape[0], c:c + b.shape[1]].set(b)
        r += b.shape[0]
        c += b.shape[1]
    return out


def _unfold_scrambled(x, k, stride, padding):
    """F.unfold -> transpose(1,2) -> contiguous -> .view(-1, C, B, kk), in JAX.

    Returns scr of shape (L, C, B, kk) (the module's view before its final
    transpose(0,1)), built with a single vectorized gather instead of a Python
    loop over windows.
    """
    B, C, H, W = x.shape
    xp = jnp.pad(x, ((0, 0), (0, 0), (padding, padding), (padding, padding)))
    lh = (H + 2 * padding - k) // stride + 1
    lw = (W + 2 * padding - k) // stride + 1
    h_idx = (stride * jnp.arange(lh))[:, None] + jnp.arange(k)[None, :]   # (lh, k)
    w_idx = (stride * jnp.arange(lw))[:, None] + jnp.arange(k)[None, :]   # (lw, k)
    # (B, C, lh, lw, k, k) in one gather
    patches = xp[:, :, h_idx[:, None, :, None], w_idx[None, :, None, :]]
    # torch unfold flat order: [b][l][c][kh][kw]
    unf = patches.transpose(0, 2, 3, 1, 4, 5).reshape(B, lh * lw, C, k * k)
    L = lh * lw
    # flat reinterpretation, exactly like the module's .view(-1, C, B, kk)
    scr = unf.reshape(L, C, B, k * k)
    return scr, L


def cond_conv2d_forward(x, cnn_weights, w1, b1, w2, b2, *,
                        kernel_size, stride=1, padding=0, tn=512):
    B, C, H, W = x.shape
    k = kernel_size
    kk = k * k
    O = cnn_weights.shape[0]
    hidden = w1.shape[0]
    n_out = w2.shape[0]
    out_h = (H - k) // stride + 1     # module's _get_new_shape ignores padding
    out_w = (W - k) // stride + 1

    scr, L = _unfold_scrambled(x, k, stride, padding)        # (L, C, B, kk)
    # module only indexes result[w_idx] for out_h*out_w windows
    assert L == out_h * out_w, "module semantics require padding=0 here"
    # TODO(synk): padding>0 would IndexError in the original module; unsupported.

    N = L * B
    # Transposed window matrix: rows = [channel][kernel pos], lanes = l*B + b.
    win_t = scr.transpose(1, 3, 0, 2).reshape(C * kk, N).astype(jnp.float32)

    tn = min(tn, _round_up(N, 128))
    npad = _round_up(N, tn)
    if npad != N:
        win_t = jnp.pad(win_t, ((0, 0), (0, npad - N)))      # padded cols sliced off later

    # Host-side fused block-diagonal weights (channel loop collapsed).
    wa = _block_diag([cnn_weights[:, c, :].astype(jnp.float32)
                      for c in range(C)])                    # (C*O,  C*kk)
    wb = _block_diag([w1.astype(jnp.float32)] * C)           # (C*Hd, C*O)
    b1_col = jnp.tile(b1.reshape(-1, 1).astype(jnp.float32), (C, 1))   # (C*Hd, 1)
    # module adds b2 once per input channel inside its accumulation loop
    b2_col = (b2.astype(jnp.float32) * C).reshape(-1, 1)               # (n_out, 1)
    w2f = w2.astype(jnp.float32)

    kern = functools.partial(cond_conv_kernel, num_channels=C, hidden=hidden)

    out_t = pl.pallas_call(
        kern,
        out_shape=jax.ShapeDtypeStruct((n_out, npad), jnp.float32),
        grid_spec=pltpu.PrefetchScalarGridSpec(
            num_scalar_prefetch=0,
            grid=(npad // tn,),
            in_specs=[
                pl.BlockSpec((C * kk, tn), lambda n: (0, n)),        # windows tile
                pl.BlockSpec((C * O, C * kk), lambda n: (0, 0)),     # block-diag cnn W
                pl.BlockSpec((C * hidden, C * O), lambda n: (0, 0)),  # block-diag W1
                pl.BlockSpec((C * hidden, 1), lambda n: (0, 0)),     # b1 (tiled)
                pl.BlockSpec((n_out, hidden), lambda n: (0, 0)),     # W2
                pl.BlockSpec((n_out, 1), lambda n: (0, 0)),          # C * b2
            ],
            out_specs=pl.BlockSpec((n_out, tn), lambda n: (0, n)),   # lane-dense output
        ),
        compiler_params=pltpu.CompilerParams(
            dimension_semantics=("parallel",)),
    )(win_t, wa, wb, b1_col, w2f, b2_col)

    out = out_t[:, :N].T                                        # (N, n_out), n = l*B + b
    result = out.reshape(out_h, out_w, B, n_out).transpose(2, 3, 0, 1)
    return result


def _reference(x, cnn_weights, w1, b1, w2, b2, *, kernel_size, stride=1, padding=0):
    """Pure-JAX mirror of the module's loops (per-channel, unfused, f32-exact)."""
    B, C, H, W = x.shape
    k = kernel_size
    out_h = (H - k) // stride + 1
    out_w = (W - k) // stride + 1
    scr, L = _unfold_scrambled(x, k, stride, padding)
    windows = scr.transpose(1, 0, 2, 3)                          # (C, L, B, kk)
    hi = jax.lax.Precision.HIGHEST
    out = jnp.zeros((L, B, w2.shape[0]), jnp.float32)
    for c in range(C):
        conv = jnp.maximum(
            jnp.einsum("lbp,op->lbo", windows[c], cnn_weights[:, c, :], precision=hi), 0.0)
        h = jnp.maximum(jnp.einsum("lbo,ho->lbh", conv, w1, precision=hi) + b1, 0.0)
        out = out + jnp.einsum("lbh,jh->lbj", h, w2, precision=hi) + b2
    return out.reshape(out_h, out_w, B, -1).transpose(2, 3, 0, 1)


if __name__ == "__main__":
    # Module configuration
    in_channels, out_channels, kernel_size = 3, 8, 3
    stride, padding = 1, 0
    hidden, n_out = 24, 3

    # Small deterministic inputs / parameters
    key = jax.random.PRNGKey(0)
    kx, kw, k1, kb1, k2, kb2 = jax.random.split(key, 6)
    B, H, W = 4, 8, 8
    x = jax.random.normal(kx, (B, in_channels, H, W), dtype=jnp.float32)
    cnn_weights = jax.random.normal(
        kw, (out_channels, in_channels, kernel_size * kernel_size), dtype=jnp.float32) * 0.1
    w1 = jax.random.normal(k1, (hidden, out_channels), dtype=jnp.float32) * 0.1
    b1 = jax.random.normal(kb1, (hidden,), dtype=jnp.float32) * 0.1
    w2 = jax.random.normal(k2, (n_out, hidden), dtype=jnp.float32) * 0.1
    b2 = jax.random.normal(kb2, (n_out,), dtype=jnp.float32) * 0.1

    result = cond_conv2d_forward(
        x, cnn_weights, w1, b1, w2, b2,
        kernel_size=kernel_size, stride=stride, padding=padding)
    result = jax.block_until_ready(result)

    out_h = (H - kernel_size) // stride + 1
    out_w = (W - kernel_size) // stride + 1
    ref = _reference(x, cnn_weights, w1, b1, w2, b2,
                     kernel_size=kernel_size, stride=stride, padding=padding)

    assert result.shape == (B, n_out, out_h, out_w), result.shape
    assert jnp.allclose(result, ref, atol=1e-4, rtol=1e-4)
    print("KERNEL_OK")
</pallas_src>

<mosaic_0001>
module attributes {stable_mosaic.version = 11 : i64} {
  func.func @cond_conv_kernel(%arg0: i32, %arg1: memref<27x256xf32, #tpu.memory_space<vmem>>, %arg2: memref<24x27xf32, #tpu.memory_space<vmem>>, %arg3: memref<72x24xf32, #tpu.memory_space<vmem>>, %arg4: memref<72x1xf32, #tpu.memory_space<vmem>>, %arg5: memref<3x24xf32, #tpu.memory_space<vmem>>, %arg6: memref<3x1xf32, #tpu.memory_space<vmem>>, %arg7: memref<3x256xf32, #tpu.memory_space<vmem>>) attributes {dimension_semantics = [#tpu.dimension_semantics<parallel>], iteration_bounds = array<i64: 1>, scalar_prefetch = 0 : i64, scratch_operands = 0 : i64, tpu.core_type = #tpu.core_type<tc>, window_params = [{transform_indices = @transform_0, window_bounds = array<i64: 27, 256>}, {pipeline_mode = #tpu.pipeline_mode<synchronous>, transform_indices = @transform_1, window_bounds = array<i64: 24, 27>}, {pipeline_mode = #tpu.pipeline_mode<synchronous>, transform_indices = @transform_2, window_bounds = array<i64: 72, 24>}, {pipeline_mode = #tpu.pipeline_mode<synchronous>, transform_indices = @transform_3, window_bounds = array<i64: 72, 1>}, {pipeline_mode = #tpu.pipeline_mode<synchronous>, transform_indices = @transform_4, window_bounds = array<i64: 3, 24>}, {pipeline_mode = #tpu.pipeline_mode<synchronous>, transform_indices = @transform_5, window_bounds = array<i64: 3, 1>}, {transform_indices = @transform_6, window_bounds = array<i64: 3, 256>}]} {
    %c0 = arith.constant 0 : index
    %c0_0 = arith.constant 0 : index
    %0 = vector.load %arg1[%c0, %c0_0] : memref<27x256xf32, #tpu.memory_space<vmem>>, vector<27x256xf32>
    %c0_1 = arith.constant 0 : index
    %c0_2 = arith.constant 0 : index
    %1 = vector.load %arg2[%c0_1, %c0_2] : memref<24x27xf32, #tpu.memory_space<vmem>>, vector<24x27xf32>
    %cst = arith.constant dense<0.000000e+00> : vector<24x256xf32>
    %2 = tpu.matmul %1, %0, %cst {dimension_numbers = #tpu.dot_dimension_numbers<[1], [0], [0], [1], [0, 0, 1, 1], [], []>} : vector<24x27xf32>, vector<27x256xf32>, vector<24x256xf32> -> vector<24x256xf32>
    %cst_3 = arith.constant 0.000000e+00 : f32
    %3 = vector.broadcast %cst_3 : f32 to vector<24x256xf32>
    %4 = arith.maximumf %2, %3 : vector<24x256xf32>
    %c0_4 = arith.constant 0 : index
    %c0_5 = arith.constant 0 : index
    %5 = vector.load %arg3[%c0_4, %c0_5] : memref<72x24xf32, #tpu.memory_space<vmem>>, vector<72x24xf32>
    %cst_6 = arith.constant dense<0.000000e+00> : vector<72x256xf32>
    %6 = tpu.matmul %5, %4, %cst_6 {dimension_numbers = #tpu.dot_dimension_numbers<[1], [0], [0], [1], [0, 0, 1, 1], [], []>} : vector<72x24xf32>, vector<24x256xf32>, vector<72x256xf32> -> vector<72x256xf32>
    %c0_7 = arith.constant 0 : index
    %c0_8 = arith.constant 0 : index
    %7 = vector.load %arg4[%c0_7, %c0_8] : memref<72x1xf32, #tpu.memory_space<vmem>>, vector<72x1xf32>
    %8 = vector.broadcast %7 : vector<72x1xf32> to vector<72x256xf32>
    %9 = arith.addf %6, %8 : vector<72x256xf32>
    %cst_9 = arith.constant 0.000000e+00 : f32
    %10 = vector.broadcast %cst_9 : f32 to vector<72x256xf32>
    %11 = arith.maximumf %9, %10 : vector<72x256xf32>
    %12 = vector.extract_strided_slice %11 {offsets = [0, 0], sizes = [24, 256], strides = [1, 1]} : vector<72x256xf32> to vector<24x256xf32>
    %13 = vector.extract_strided_slice %11 {offsets = [24, 0], sizes = [24, 256], strides = [1, 1]} : vector<72x256xf32> to vector<24x256xf32>
    %14 = arith.addf %12, %13 : vector<24x256xf32>
    %15 = vector.extract_strided_slice %11 {offsets = [48, 0], sizes = [24, 256], strides = [1, 1]} : vector<72x256xf32> to vector<24x256xf32>
    %16 = arith.addf %14, %15 : vector<24x256xf32>
    %c0_10 = arith.constant 0 : index
    %c0_11 = arith.constant 0 : index
    %17 = vector.load %arg5[%c0_10, %c0_11] : memref<3x24xf32, #tpu.memory_space<vmem>>, vector<3x24xf32>
    %cst_12 = arith.constant dense<0.000000e+00> : vector<3x256xf32>
    %18 = tpu.matmul %17, %16, %cst_12 {dimension_numbers = #tpu.dot_dimension_numbers<[1], [0], [0], [1], [0, 0, 1, 1], [], []>} : vector<3x24xf32>, vector<24x256xf32>, vector<3x256xf32> -> vector<3x256xf32>
    %c0_13 = arith.constant 0 : index
    %c0_14 = arith.constant 0 : index
    %19 = vector.load %arg6[%c0_13, %c0_14] : memref<3x1xf32, #tpu.memory_space<vmem>>, vector<3x1xf32>
    %20 = vector.broadcast %19 : vector<3x1xf32> to vector<3x256xf32>
    %21 = arith.addf %18, %20 : vector<3x256xf32>
    %c0_15 = arith.constant 0 : index
    %c0_16 = arith.constant 0 : index
    %22 = vector.load %arg7[%c0_15, %c0_16] : memref<3x256xf32, #tpu.memory_space<vmem>>, vector<3x256xf32>
    tpu.vector_store %arg7[%c0_15, %c0_16], %21 {strides = array<i32>} : memref<3x256xf32, #tpu.memory_space<vmem>>, vector<3x256xf32>,
    return
  }
  func.func @transform_0(%arg0: i32) -> (i32, i32) {
    %c0_i32 = arith.constant 0 : i32
    %c0_i32_0 = arith.constant 0 : i32
    return %c0_i32, %arg0 : i32, i32
  }
  func.func @transform_1(%arg0: i32) -> (i32, i32) {
    %c0_i32 = arith.constant 0 : i32
    %c0_i32_0 = arith.constant 0 : i32
    %c0_i32_1 = arith.constant 0 : i32
    return %c0_i32, %c0_i32_0 : i32, i32
  }
  func.func @transform_2(%arg0: i32) -> (i32, i32) {
    %c0_i32 = arith.constant 0 : i32
    %c0_i32_0 = arith.constant 0 : i32
    %c0_i32_1 = arith.constant 0 : i32
    return %c0_i32, %c0_i32_0 : i32, i32
  }
  func.func @transform_3(%arg0: i32) -> (i32, i32) {
    %c0_i32 = arith.constant 0 : i32
    %c0_i32_0 = arith.constant 0 : i32
    %c0_i32_1 = arith.constant 0 : i32
    return %c0_i32, %c0_i32_0 : i32, i32
  }
  func.func @transform_4(%arg0: i32) -> (i32, i32) {
    %c0_i32 = arith.constant 0 : i32
    %c0_i32_0 = arith.constant 0 : i32
    %c0_i32_1 = arith.constant 0 : i32
    return %c0_i32, %c0_i32_0 : i32, i32
  }
  func.func @transform_5(%arg0: i32) -> (i32, i32) {
    %c0_i32 = arith.constant 0 : i32
    %c0_i32_0 = arith.constant 0 : i32
    %c0_i32_1 = arith.constant 0 : i32
    return %c0_i32, %c0_i32_0 : i32, i32
  }
  func.func @transform_6(%arg0: i32) -> (i32, i32) {
    %c0_i32 = arith.constant 0 : i32
    %c0_i32_0 = arith.constant 0 : i32
    return %c0_i32, %arg0 : i32, i32
  }
}

</mosaic_0001>

<bundles_post_ra>
// kernel: tpu_custom_call.1
= control target key start
LH: loop header
LB: loop body
LE: loop exit
PB: predicated region body
PF: predicated region fallthrough
CT: control target
= control target key end

     0   :  { %vm45_vm0 = vcmask 1042432   ;;  %s610_s0 = inlined_call_operand.vmem [shape: f32[27,256], index: 0, kind: input, shape index: {}]   ;;  %s611_s1 = inlined_call_operand.vmem [shape: f32[24,27], index: 1, kind: input, shape index: {}]   ;;  %s612_s2 = inlined_call_operand.vmem [shape: f32[72,24], index: 2, kind: input, shape index: {}]   ;;  %s613_s3 = inlined_call_operand.vmem [shape: f32[72,1], index: 3, kind: input, shape index: {}]   ;;  %s614_s4 = inlined_call_operand.vmem [shape: f32[3,24], index: 4, kind: input, shape index: {}]   ;;  %s615_s5 = inlined_call_operand.vmem [shape: f32[3,1], index: 5, kind: input, shape index: {}]   ;;  %s616_s6 = inlined_call_operand.hbm [shape: f32[3,256], index: 6, kind: output, shape index: {}]  }
   0x1   :  { %v30_v0 = vld [vmem:[%s610_s0 + $0x30] sm:$0x7]  ;;  %v31_v1 = vld [vmem:[%s610_s0 + $0x38] sm:$0x7]  ;;  %v28_v2 = vld [vmem:[%s610_s0 + $0x20] sm:$0xff] }
   0x2   :  { %392 = vmatpush.msk.msra.mxu0 %vm45_vm0, %v30_v0  ;;  %396 = vmatpush.msk.msra.mxu1 %vm45_vm0, %v31_v1  ;;  %v29_v3 = vld [vmem:[%s610_s0 + $0x28] sm:$0xff]  ;;  %v26_v4 = vld [vmem:[%s610_s0 + $0x10] sm:$0xff]  ;;  %v27_v5 = vld [vmem:[%s610_s0 + $0x18] sm:$0xff] }
   0x4   :  { %65 = vmatpush.msra.mxu0 %v28_v2  ;;  %91 = vmatpush.msra.mxu1 %v29_v3 }
   0x5   :  { %11 = vsyncpa [#allocation3], 0  ;;  %v24_v6 = vld [vmem:[%s610_s0] sm:$0xff]  ;;  %v25_v7 = vld [vmem:[%s610_s0 + $0x8] sm:$0xff]  ;;  %vm35_vm1 = vcmask 220160   ;;  %v457_v11 = vmov 0  }
   0x6   :  { %66 = vmatpush.msra.mxu0 %v26_v4  ;;  %92 = vmatpush.msra.mxu1 %v27_v5  ;;  %v32_v8 = vld [vmem:[%s611_s1] sm:$0xff]  ;;  %v33_v9 = vld [vmem:[%s611_s1 + $0x8] sm:$0xff]  ;;  %v34_v10 = vld [vmem:[%s611_s1 + $0x10] sm:$0xff]  ;;  %vm173_vm2 = vcmask 195584   ;;  %s458_s28 = smov [#allocation2]   ;;  %s383_s8 = sshll.u32 %s616_s6, 4  ;;  %s384_s8 = int_to_ptr.hbm [resolvable:$true] %s383_s8 }
   0x7   :  { %428 = vset.pattern.permute.xlu0 %v457_v11  ;;  %429 = vset.pattern.permute.xlu1 %v457_v11  ;;  %v121_v14 = vld [vmem:[%s613_s3 + $0x10] sm:$0xff]  ;;  %v124_v17 = vld [vmem:[%s613_s3 + $0x28] sm:$0xff]  ;;  %v122_v22 = vld [vmem:[%s613_s3 + $0x18] sm:$0xff]  ;;  %s381_s29 = sshll.u32 %s458_s28, 4  ;;  %vm372_vm3 = vcmask 1043456   ;;  %s382_s29 = int_to_ptr.vmem [resolvable:$true] %s381_s29 }
   0x8   :  { %67 = vmatpush.msra.mxu0 %v24_v6  ;;  %93 = vmatpush.msra.mxu1 %v25_v7  ;;  %v120_v23 = vld [vmem:[%s613_s3 + $0x8] sm:$0xff]  ;;  %v112_v28 = vld [vmem:[%s612_s2 + $0x10] sm:$0xff]  ;;  %v110_v29 = vld [vmem:[%s612_s2] sm:$0xff] }
   0x9   :  { %393 = vmatmul.msk.f32.vlgmr.msra.gmra.mxu0 %vm35_vm1, %v32_v8  ;;  %397 = vmatmul.msk.f32.vlgmr.msra.gmra.mxu1 %vm35_vm1, %v32_v8  ;;  %v123_v30 = vld [vmem:[%s613_s3 + $0x20] sm:$0xff]  ;;  %v113_v31 = vld [vmem:[%s612_s2 + $0x18] sm:$0xff]  ;;  %v111_v32 = vld [vmem:[%s612_s2 + $0x8] sm:$0xff] }
   0xa   :  { %430 = vset.pattern.permute.xlu2 %v457_v11  ;;  %140 = vperm.xlu0 %428, %v121_v14   ;;  %v127_v33 = vld [vmem:[%s613_s3 + $0x40] sm:$0xff]  ;;  %v126_v37 = vld [vmem:[%s613_s3 + $0x38] sm:$0xff]  ;;  %v115_v38 = vld [vmem:[%s612_s2 + $0x28] sm:$0xff] }
   0xb   :  { %135 = vperm.xlu1 %429, %v120_v23   ;;  %170 = vperm.xlu2 %430, %v127_v33   ;;  %v114_v34 = vld [vmem:[%s612_s2 + $0x20] sm:$0xff]  ;;  %v125_v39 = vld [vmem:[%s613_s3 + $0x30] sm:$0xff]  ;;  %v117_v41 = vld [vmem:[%s612_s2 + $0x38] sm:$0xff] }
   0xc   :  { %v119_v35 = vld [vmem:[%s613_s3] sm:$0xff]  ;;  %v116_v40 = vld [vmem:[%s612_s2 + $0x30] sm:$0xff] }
   0xd   :  { %v320_v36 = vld [vmem:[%s615_s5] sm:$0x7] }
   0xe   :  { %v118_v42 = vld [vmem:[%s612_s2 + $0x40] sm:$0xff] }
  0x11   :  { %394 = vmatmul.msk.f32.gmra.mxu0 %vm35_vm1, %v33_v9  ;;  %398 = vmatmul.msk.f32.gmra.mxu1 %vm35_vm1, %v33_v9 }
  0x12   :  { %155 = vperm.xlu0 %428, %v124_v17  }
  0x13   :  { %150 = vperm.xlu1 %429, %v123_v30   ;;  %130 = vperm.xlu2 %430, %v119_v35  }
  0x19   :  { %395 = vmatmul.msk.f32.gmra.mxu0 %vm35_vm1, %v34_v10  ;;  %399 = vmatmul.msk.f32.gmra.mxu1 %vm35_vm1, %v34_v10 }
  0x1a   :  { %145 = vperm.xlu0 %428, %v122_v22  }
  0x1b   :  { %165 = vperm.xlu1 %429, %v126_v37   ;;  %160 = vperm.xlu2 %430, %v125_v39  }
  0x22   :  { %323 = vperm.xlu0 %428, %v320_v36  }
  0x65   :  { %v171_v52 = vpop.permute.xlu2 %170 }
  0x6d   :  { %v131_v59 = vpop.permute.xlu2 %130 }
  0x7c   :  { %v141_v49 = vpop.permute.xlu0 %140 }
  0x7d   :  { %v136_v53 = vpop.permute.xlu1 %135 }
  0x84   :  { %v156_v58 = vpop.permute.xlu0 %155 }
  0x85   :  { %v151_v60 = vpop.permute.xlu1 %150 }
  0x86   :  { %v69_v12 = vpop.f32.mrf.mxu0  ;;  %v95_v13 = vpop.f32.mrf.mxu1 }
  0x87   :  { %v104_v26 = vmax.f32 %v69_v12, 0.0  ;;  %v105_v27 = vmax.f32 %v95_v13, 0.0 }
  0x8c   :  { %v146_v7 = vpop.permute.xlu0 %145 }
  0x8e   :  { %v72_v15 = vpop.f32.mrf.mxu0  ;;  %v98_v16 = vpop.f32.mrf.mxu1 }
  0x8f   :  { %v106_v24 = vmax.f32 %v72_v15, 0.0  ;;  %v107_v25 = vmax.f32 %v98_v16, 0.0 }
  0x96   :  { %v75_v18 = vpop.f32.mrf.mxu0  ;;  %v101_v19 = vpop.f32.mrf.mxu1 }
  0x97   :  { %v108_v20 = vmax.f32 %v75_v18, 0.0  ;;  %v109_v21 = vmax.f32 %v101_v19, 0.0  ;;  %v161_v18 = vpop.permute.xlu2 %160  ;;  %v166_v19 = vpop.permute.xlu1 %165 }
  0x99   :  { %214 = vmatpush.msrb.mxu0 %v108_v20  ;;  %420 = vmatpush.msra.mxu2 %v108_v20 }
  0x9a   :  { %258 = vmatpush.msrb.mxu1 %v109_v21  ;;  %423 = vmatpush.msra.mxu3 %v109_v21 }
  0x9b   :  { %215 = vmatpush.msrb.mxu0 %v106_v24  ;;  %421 = vmatpush.msra.mxu2 %v106_v24 }
  0x9c   :  { %259 = vmatpush.msrb.mxu1 %v107_v25  ;;  %424 = vmatpush.msra.mxu3 %v107_v25 }
  0x9d   :  { %216 = vmatpush.msrb.mxu0 %v104_v26  ;;  %422 = vmatpush.msra.mxu2 %v104_v26 }
  0x9e   :  { %260 = vmatpush.msrb.mxu1 %v105_v27  ;;  %425 = vmatpush.msra.mxu3 %v105_v27 }
  0x9f   :  { %402 = vmatmul.msk.f32.vlgmr.msra.gmra.mxu2 %vm173_vm2, %v112_v28  ;;  %411 = vmatmul.msk.f32.vlgmr.msra.gmra.mxu3 %vm173_vm2, %v112_v28 }
  0xa0   :  { %409 = vmatmul.msk.f32.vlgmr.msrb.gmra.mxu1 %vm173_vm2, %v110_v29  ;;  %400 = vmatmul.msk.f32.vlgmr.msrb.gmra.mxu0 %vm173_vm2, %v110_v29 }
  0xa7   :  { %403 = vmatmul.msk.f32.gmra.mxu2 %vm173_vm2, %v113_v31  ;;  %412 = vmatmul.msk.f32.gmra.mxu3 %vm173_vm2, %v113_v31 }
  0xa8   :  { %410 = vmatmul.msk.f32.gmra.mxu1 %vm173_vm2, %v111_v32  ;;  %401 = vmatmul.msk.f32.gmra.mxu0 %vm173_vm2, %v111_v32 }
  0xaf   :  { %404 = vmatmul.msk.f32.gmra.mxu2 %vm173_vm2, %v114_v34  ;;  %413 = vmatmul.msk.f32.gmra.mxu3 %vm173_vm2, %v114_v34 }
  0xb7   :  { %405 = vmatmul.msk.f32.gmra.mxu2 %vm173_vm2, %v115_v38  ;;  %414 = vmatmul.msk.f32.gmra.mxu3 %vm173_vm2, %v115_v38 }
  0xbf   :  { %406 = vmatmul.msk.f32.gmra.mxu2 %vm173_vm2, %v116_v40  ;;  %415 = vmatmul.msk.f32.gmra.mxu3 %vm173_vm2, %v116_v40 }
  0xc7   :  { %407 = vmatmul.msk.f32.gmra.mxu2 %vm173_vm2, %v117_v41  ;;  %416 = vmatmul.msk.f32.gmra.mxu3 %vm173_vm2, %v117_v41 }
  0xcf   :  { %408 = vmatmul.msk.f32.gmra.mxu2 %vm173_vm2, %v118_v42  ;;  %417 = vmatmul.msk.f32.gmra.mxu3 %vm173_vm2, %v118_v42 }
 0x11d   :  { %v262_v54 = vpop.f32.mrf.mxu1  ;;  %v218_v55 = vpop.f32.mrf.mxu0 }
 0x11e   :  { %v263_v63 = vadd.f32 %v262_v54, %v131_v59  ;;  %v219_v0 = vadd.f32 %v218_v55, %v131_v59  ;;  %v319_v54 = vld [vmem:[%s614_s4] sm:$0x7]  ;;  %v324_v55 = vpop.permute.xlu0 %323 }
 0x120   :  { %v290_v12 = vmax.f32 %v263_v63, 0.0  ;;  %v289_v13 = vmax.f32 %v219_v0, 0.0 }
 0x122   :  { %v224_v43 = vpop.f32.mrf.mxu2  ;;  %v268_v44 = vpop.f32.mrf.mxu3 }
 0x123   :  { %v225_v5 = vadd.f32 %v224_v43, %v141_v49  ;;  %v269_v6 = vadd.f32 %v268_v44, %v141_v49 }
 0x125   :  { %v265_v1 = vpop.f32.mrf.mxu1  ;;  %v221_v2 = vpop.f32.mrf.mxu0  ;;  %v293_v20 = vmax.f32 %v225_v5, 0.0  ;;  %v294_v21 = vmax.f32 %v269_v6, 0.0 }
 0x126   :  { %v266_v9 = vadd.f32 %v265_v1, %v136_v53  ;;  %v222_v11 = vadd.f32 %v221_v2, %v136_v53 }
 0x128   :  { %v292_v25 = vmax.f32 %v266_v9, 0.0  ;;  %v291_v27 = vmax.f32 %v222_v11, 0.0 }
 0x12a   :  { %v227_v45 = vpop.f32.mrf.mxu2  ;;  %v271_v46 = vpop.f32.mrf.mxu3 }
 0x12b   :  { %v228_v14 = vadd.f32 %v227_v45, %v146_v7  ;;  %v272_v15 = vadd.f32 %v271_v46, %v146_v7 }
 0x12d   :  { %v295_v34 = vmax.f32 %v228_v14, 0.0  ;;  %v296_v35 = vmax.f32 %v272_v15, 0.0 }
 0x12f   :  { %v307_v49 = vadd.f32 %v295_v34, %v289_v13 }
 0x132   :  { %v230_v47 = vpop.f32.mrf.mxu2  ;;  %v274_v48 = vpop.f32.mrf.mxu3 }
 0x133   :  { %v231_v8 = vadd.f32 %v230_v47, %v151_v60  ;;  %v275_v10 = vadd.f32 %v274_v48, %v151_v60  ;;  %v308_v48 = vadd.f32 %v296_v35, %v290_v12 }
 0x135   :  { %v297_v24 = vmax.f32 %v231_v8, 0.0  ;;  %v298_v26 = vmax.f32 %v275_v10, 0.0 }
 0x137   :  { %v310_v42 = vadd.f32 %v298_v26, %v292_v25  ;;  %v309_v43 = vadd.f32 %v297_v24, %v291_v27 }
 0x13a   :  { %v233_v50 = vpop.f32.mrf.mxu2  ;;  %v277_v51 = vpop.f32.mrf.mxu3 }
 0x13b   :  { %v234_v3 = vadd.f32 %v233_v50, %v156_v58  ;;  %v278_v4 = vadd.f32 %v277_v51, %v156_v58 }
 0x13d   :  { %v299_v16 = vmax.f32 %v234_v3, 0.0  ;;  %v300_v17 = vmax.f32 %v278_v4, 0.0 }
 0x13f   :  { %v311_v36 = vadd.f32 %v299_v16, %v293_v20  ;;  %v312_v37 = vadd.f32 %v300_v17, %v294_v21 }
 0x142   :  { %v236_v56 = vpop.f32.mrf.mxu2  ;;  %v280_v57 = vpop.f32.mrf.mxu3 }
 0x143   :  { %v237_v30 = vadd.f32 %v236_v56, %v161_v18  ;;  %v281_v31 = vadd.f32 %v280_v57, %v161_v18 }
 0x145   :  { %v301_v44 = vmax.f32 %v237_v30, 0.0  ;;  %v302_v45 = vmax.f32 %v281_v31, 0.0 }
 0x147   :  { %v314_v53 = vadd.f32 %v308_v48, %v302_v45 }
 0x14a   :  { %v239_v61 = vpop.f32.mrf.mxu2  ;;  %v283_v62 = vpop.f32.mrf.mxu3 }
 0x14b   :  { %v240_v22 = vadd.f32 %v239_v61, %v166_v19  ;;  %v284_v23 = vadd.f32 %v283_v62, %v166_v19 }
 0x14d   :  { %v303_v38 = vmax.f32 %v240_v22, 0.0  ;;  %v304_v39 = vmax.f32 %v284_v23, 0.0 }
 0x14f   :  { %v315_v50 = vadd.f32 %v309_v43, %v303_v38  ;;  %v316_v51 = vadd.f32 %v310_v42, %v304_v39 }
 0x152   :  { %v242_v28 = vpop.f32.mrf.mxu2  ;;  %v286_v29 = vpop.f32.mrf.mxu3 }
 0x153   :  { %v243_v32 = vadd.f32 %v242_v28, %v171_v52  ;;  %v287_v33 = vadd.f32 %v286_v29, %v171_v52  ;;  %v313_v52 = vadd.f32 %v307_v49, %v301_v44 }
 0x155   :  { %v305_v40 = vmax.f32 %v243_v32, 0.0  ;;  %v306_v41 = vmax.f32 %v287_v33, 0.0 }
 0x157   :  { %v317_v46 = vadd.f32 %v311_v36, %v305_v40  ;;  %v318_v47 = vadd.f32 %v312_v37, %v306_v41 }
 0x159   :  { %342 = vmatpush.msra.mxu0 %v317_v46  ;;  %362 = vmatpush.msra.mxu1 %v318_v47 }
 0x15b   :  { %343 = vmatpush.msra.mxu0 %v315_v50  ;;  %363 = vmatpush.msra.mxu1 %v316_v51 }
 0x15d   :  { %344 = vmatpush.msra.mxu0 %v313_v52  ;;  %364 = vmatpush.msra.mxu1 %v314_v53 }
 0x15e   :  { %418 = vmatmul.msk.f32.vlgmr.msra.gmra.mxu0 %vm173_vm2, %v319_v54  ;;  %419 = vmatmul.msk.f32.vlgmr.msra.gmra.mxu1 %vm173_vm2, %v319_v54 }
 0x1db   :  { %v346_v56 = vpop.f32.mrf.mxu0  ;;  %v366_v57 = vpop.f32.mrf.mxu1 }
 0x1dc   :  { %v367_v58 = vadd.f32 %v366_v57, %v324_v55  ;;  %v347_v59 = vadd.f32 %v346_v56, %v324_v55 }
 0x1de   :  { %v371_v60 = vrot.slane %v367_v58, 4 }
 0x1e0   :  { %v373_v61 = vsel %vm372_vm3, %v347_v59, %v371_v60 }
 0x1e1   :  { %375 = vst [vmem:[#allocation2] sm:$0x77] %v373_v61 }
 0x1e2   :  { %386 = dma.vmem_to_hbm [thread:$0]  %s382_s29, 128, %s384_s8, [#allocation3]  }
 0x1e3   :  { %455 = dma.done.wait [#allocation3], 128  }
 0x1e4   :  { %456 = vsyncadd [#allocation3], 4294967168 }
 0x1e5   :  { %391 = vsyncpa [#allocation3], 1 }

</bundles_post_ra>
